<compile_context>
chip_gen: v7x
topology: tpu7x:2x2x1
jax: 0.10.0
libtpu: 0.0.40
codegen_flags: <defaults>
</compile_context>

<pallas_src>
import functools

import jax
import jax.numpy as jnp
import numpy as np
from jax.experimental import pallas as pl
from jax.experimental.pallas import tpu as pltpu


def _cdiv(a, b):
    return -(-a // b)


def _round_up(a, m):
    return _cdiv(a, m) * m


# ----------------------------------------------------------------------------
# boundary handling
# ----------------------------------------------------------------------------
def _reflect_dct2(idx, size):
    """Map integer indices into [0, size-1] with the 'dct2'/reflect boundary.

    Reflection planes sit at -0.5 and size-0.5 (so -1 -> 0 and size -> size-1).
    A single reflection per side (cheap VPU compare/selects) is exact for idx
    in [-size, 2*size]; anything even further out is clamped.
    """
    # TODO(synk): fully periodic dct2 folding (idx % (2*size)) for coordinates
    # more than one FOV outside the lattice; the clamp degrades that rare case
    # to replicate behaviour.
    idx = jnp.where(idx < 0, -1 - idx, idx)
    idx = jnp.where(idx >= size, 2 * size - 1 - idx, idx)
    return jnp.clip(idx, 0, size - 1)


# ----------------------------------------------------------------------------
# kernel
# ----------------------------------------------------------------------------
def _push_count_kernel(x_ref, g_ref, out_ref, *, hout, wout, n_total,
                       compute_dtype):
    """One (batch b, column-tile j, N-chunk k) grid step.

    Block shapes:
      x_ref:   (1, C, tk)     image channels, native dtype
      g_ref:   (1, 2, tk)     row 0 = target row coord, row 1 = target column
      out_ref: (1, C1*Hpad8, tw)  f32, resident across the k axis (accumulator)
    """
    j = pl.program_id(1)
    k = pl.program_id(2)

    cd = compute_dtype
    c = x_ref.shape[1]
    tk = x_ref.shape[2]
    mtot, tw = out_ref.shape[1], out_ref.shape[2]
    hpad8 = mtot // (c + 1)

    # --- validity mask for the (possibly partial) last N chunk --------------
    lane = jax.lax.broadcasted_iota(jnp.int32, (1, tk), 1)
    valid = (k * tk + lane) < n_total                        # (1, tk) bool

    g = g_ref[0]                                             # (2, tk) f32
    gy = jnp.where(valid, g[0:1, :], 0.0)                    # sanitize tail
    gx = jnp.where(valid, g[1:2, :], 0.0)

    zero = jnp.zeros((), cd)

    # --- row (H axis) weights, built directly in compute dtype --------------
    fy = jnp.floor(gy)
    wy = gy - fy                                             # (1, tk)
    iy0 = _reflect_dct2(fy.astype(jnp.int32), hout)
    iy1 = _reflect_dct2(fy.astype(jnp.int32) + 1, hout)
    wy0 = jnp.where(valid, 1.0 - wy, 0.0).astype(cd)         # tail mass killed
    wy1 = jnp.where(valid, wy, 0.0).astype(cd)
    rows = jax.lax.broadcasted_iota(jnp.int32, (hpad8, tk), 0)
    wyt = (jnp.where(rows == iy0, wy0, zero) +
           jnp.where(rows == iy1, wy1, zero))                # (Hpad8, tk)

    # --- column (W axis) weights for this column tile -----------------------
    # TODO(synk): when hpad8 == tw the two iotas could be shared.
    fx = jnp.floor(gx)
    wx = gx - fx
    ix0 = _reflect_dct2(fx.astype(jnp.int32), wout)
    ix1 = _reflect_dct2(fx.astype(jnp.int32) + 1, wout)
    wx0 = (1.0 - wx).astype(cd)
    wx1 = wx.astype(cd)
    cols = j * tw + jax.lax.broadcasted_iota(jnp.int32, (tw, tk), 0)
    wxt = (jnp.where(cols == ix0, wx0, zero) +
           jnp.where(cols == ix1, wx1, zero))                # (tw, tk)

    # --- LHS: [count ; channels] folded onto the MXU M axis -----------------
    xv = jnp.where(valid, x_ref[0], 0).astype(cd)            # (C, tk) NaN-safe
    scale = jnp.concatenate([jnp.ones((1, tk), cd), xv], axis=0)   # (C1, tk)
    lhs = (scale[:, None, :] * wyt[None, :, :]).reshape(mtot, tk)  # (C1*Hpad8, tk)

    contrib = jax.lax.dot_general(
        lhs, wxt,
        dimension_numbers=(((1,), (1,)), ((), ())),
        preferred_element_type=jnp.float32)                  # (C1*Hpad8, tw)

    @pl.when(k == 0)
    def _():
        out_ref[0] = contrib

    @pl.when(k > 0)
    def _():
        out_ref[0] += contrib


# ----------------------------------------------------------------------------
# tiling / VMEM budgeting helpers
# ----------------------------------------------------------------------------
def _vmem_limit_bytes():
    """Scoped-VMEM limit: ~75% of physical, capped at 96 MiB."""
    try:
        cap = int(pltpu.get_tpu_info().vmem_capacity_bytes)
    except Exception:                       # query unavailable: assume v7x 64 MiB
        cap = 64 << 20
    return min((cap * 3) // 4, 96 << 20)


def _choose_col_tiling(wout, mtot, vmem_limit, batch):
    """Column tile width tw (multiple of 128), tile count, padded width."""
    wpad = _round_up(wout, 128)
    # largest column tile whose resident (double-buffered) f32 out block fits
    # in about a third of the VMEM budget
    max_tw = max(128, (((vmem_limit // 3) // (2 * mtot * 4)) // 128) * 128)
    wt = _cdiv(wpad, max_tw)
    if batch == 1 and wt == 1 and wpad >= 256:
        wt = 2          # let both v7x TensorCores get work when B == 1
    tw = _round_up(_cdiv(wpad, wt), 128)
    wt = _cdiv(wpad, tw)
    return tw, wt, wt * tw


def _choose_tile_k(n, c, x_bytes, cd_bytes, hpad8, tw, mtot, vmem_limit):
    """Pick the voxel-chunk size tk (multiple of 128) so everything fits VMEM."""
    fixed = 2 * mtot * tw * 4                       # resident f32 output block
    budget = max(((vmem_limit - fixed) * 3) // 4, 1 << 20)
    per_k = (2 * (c * x_bytes + 2 * 4)              # double-buffered x + coords
             + 4 * (hpad8 + tw)                     # int32 row/col iotas
             + cd_bytes * (hpad8 + tw + mtot)       # wyt, wxt, lhs
             + 64)                                  # (1, tk) temporaries, slack
    tk = max(128, min(4096, ((budget // per_k) // 128) * 128))
    return min(tk, _round_up(n, 128))


# ----------------------------------------------------------------------------
# wrapper
# ----------------------------------------------------------------------------
def grid_push_count(x, grid, out_shape=None, compute_dtype=jnp.float32):
    """nitorch grid_push + grid_count (2D, linear interpolation, dct2 bound)."""
    B, C, Hin, Win = x.shape
    assert grid.shape == (B, Hin, Win, 2)
    if out_shape is None:
        Hout, Wout = Hin, Win
    else:
        Hout, Wout = out_shape
    C1 = C + 1
    N = Hin * Win
    Hpad8 = _round_up(Hout, 8)
    Mtot = C1 * Hpad8

    vmem_limit = _vmem_limit_bytes()
    tw, Wt, Wpad = _choose_col_tiling(Wout, Mtot, vmem_limit, B)
    x_bytes = jnp.dtype(x.dtype).itemsize
    cd_bytes = jnp.dtype(compute_dtype).itemsize
    tk = _choose_tile_k(N, C, x_bytes, cd_bytes, Hpad8, tw, Mtot, vmem_limit)
    Kt = _cdiv(N, tk)

    # No ones-plane, no f32 cast of x, no padding: x goes in its native dtype,
    # the count row and the tail-voxel mask are produced inside the kernel.
    x_flat = x.reshape(B, C, N)
    g2 = jnp.swapaxes(grid.reshape(B, N, 2).astype(jnp.float32), 1, 2)  # (B,2,N)

    kernel = functools.partial(_push_count_kernel, hout=Hout, wout=Wout,
                               n_total=N, compute_dtype=compute_dtype)

    flops = 2 * B * Wt * Kt * Mtot * tw * tk
    bytes_accessed = (B * Wt * (C * N * x_bytes + 2 * N * 4)
                      + B * Mtot * Wpad * 4)

    out = pl.pallas_call(
        kernel,
        out_shape=jax.ShapeDtypeStruct((B, Mtot, Wpad), jnp.float32),
        grid_spec=pltpu.PrefetchScalarGridSpec(
            num_scalar_prefetch=0,
            grid=(B, Wt, Kt),                 # batch / column tiles parallel,
            in_specs=[                        # voxel chunks = reduction (last)
                pl.BlockSpec((1, C, tk), lambda b, j, k: (b, 0, k)),
                pl.BlockSpec((1, 2, tk), lambda b, j, k: (b, 0, k)),
            ],
            out_specs=pl.BlockSpec((1, Mtot, tw), lambda b, j, k: (b, 0, j)),
        ),
        compiler_params=pltpu.CompilerParams(
            dimension_semantics=("parallel", "parallel", "arbitrary"),
            vmem_limit_bytes=vmem_limit),
        cost_estimate=pl.CostEstimate(flops=int(flops), transcendentals=0,
                                      bytes_accessed=int(bytes_accessed)),
    )(x_flat, g2)

    # Pure layout plumbing back to NCHW (no transposes needed: channels were
    # folded onto the row axis of the output).
    out = out.reshape(B, C1, Hpad8, Wpad)[:, :, :Hout, :Wout]
    count = out[:, 0:1].astype(x.dtype)
    push = out[:, 1:].astype(x.dtype)
    return push, count


class GridPushCount:
    """JAX/Pallas mirror of nitorch.nn.modules.spatial.GridPushCount (no params)."""

    def __init__(self, shape=None, interpolation='linear', bound='dct2',
                 extrapolate=True, compute_dtype=jnp.float32):
        self.shape = shape
        self.interpolation = interpolation
        self.bound = bound
        self.extrapolate = extrapolate
        # float32 matmul weights match the PyTorch module's precision; pass
        # jnp.bfloat16 for ~2x MXU throughput (~1e-3 relative error on the
        # bilinear fractions).
        self.compute_dtype = compute_dtype

    def __call__(self, x, grid, **overload):
        shape = overload.get('shape', self.shape)
        interpolation = overload.get('interpolation', self.interpolation)
        bound = overload.get('bound', self.bound)
        extrapolate = overload.get('extrapolate', self.extrapolate)
        compute_dtype = overload.get('compute_dtype', self.compute_dtype)
        if interpolation not in ('linear', 1):
            # TODO(synk): only order-1 (linear) splatting is implemented.
            raise NotImplementedError("only linear interpolation supported")
        if bound not in ('dct2', 'reflect'):
            # TODO(synk): only 'dct2'/'reflect' boundary condition is implemented.
            raise NotImplementedError("only dct2/reflect bound supported")
        if not extrapolate:
            # TODO(synk): extrapolate=False (drop out-of-FOV mass) not implemented.
            raise NotImplementedError("only extrapolate=True supported")
        return grid_push_count(x, grid, out_shape=shape,
                               compute_dtype=compute_dtype)


# ----------------------------------------------------------------------------
# pure NumPy reference (float64 scatter-add) for verification
# ----------------------------------------------------------------------------
def _reflect_dct2_np(i, size):
    period = 2 * size
    i = i % period
    return period - 1 - i if i >= size else i


def _reference_push_count(x, grid, hout, wout):
    x = np.asarray(x, np.float64)
    grid = np.asarray(grid, np.float64)
    B, C, Hin, Win = x.shape
    push = np.zeros((B, C, hout, wout))
    count = np.zeros((B, 1, hout, wout))
    for b in range(B):
        for r in range(Hin):
            for c in range(Win):
                gy, gx = grid[b, r, c]
                fy, fx = int(np.floor(gy)), int(np.floor(gx))
                ty, tx = gy - fy, gx - fx
                for iy, wy in ((fy, 1.0 - ty), (fy + 1, ty)):
                    oy = _reflect_dct2_np(iy, hout)
                    for ix, wx in ((fx, 1.0 - tx), (fx + 1, tx)):
                        ox = _reflect_dct2_np(ix, wout)
                        w = wy * wx
                        count[b, 0, oy, ox] += w
                        push[b, :, oy, ox] += w * x[b, :, r, c]
    return push, count


if __name__ == "__main__":
    key = jax.random.PRNGKey(0)
    B, C, H, W = 2, 4, 16, 16
    k_img, k_disp = jax.random.split(key)

    x = jax.random.normal(k_img, (B, C, H, W), dtype=jnp.float32)

    # Deformation grid = identity coordinates + small random displacement.
    rows = jnp.broadcast_to(jnp.arange(H, dtype=jnp.float32)[None, :, None], (B, H, W))
    cols = jnp.broadcast_to(jnp.arange(W, dtype=jnp.float32)[None, None, :], (B, H, W))
    ident = jnp.stack([rows, cols], axis=-1)                       # (B, H, W, 2)
    disp = 0.75 * jax.random.normal(k_disp, (B, H, W, 2), dtype=jnp.float32)
    grid = ident + disp

    module = GridPushCount()

    # Exact f32 compute path (default) and the opt-in bf16 MXU path.
    push32, count32 = module(x, grid)
    push_bf, count_bf = module(x, grid, compute_dtype=jnp.bfloat16)
    jax.block_until_ready((push32, count32, push_bf, count_bf))

    assert push32.shape == (B, C, H, W) and count32.shape == (B, 1, H, W)
    assert push_bf.shape == (B, C, H, W) and count_bf.shape == (B, 1, H, W)

    ref_push, ref_count = _reference_push_count(x, grid, H, W)

    # f32 path: tight match against the scatter-add reference.
    np.testing.assert_allclose(np.asarray(push32), ref_push, rtol=1e-4, atol=1e-4)
    np.testing.assert_allclose(np.asarray(count32), ref_count, rtol=1e-4, atol=1e-4)
    # bf16 path: deliberate precision tradeoff (~1e-3 relative on the weights).
    np.testing.assert_allclose(np.asarray(push_bf), ref_push, rtol=5e-2, atol=1e-1)
    np.testing.assert_allclose(np.asarray(count_bf), ref_count, rtol=5e-2, atol=1e-1)

    # Mass conservation sanity check (linear weights sum to 1 per input voxel,
    # and dct2 boundary keeps all mass inside the field of view).
    np.testing.assert_allclose(np.asarray(push32.sum(axis=(2, 3))),
                               np.asarray(x.sum(axis=(2, 3))),
                               rtol=1e-4, atol=1e-4)
    np.testing.assert_allclose(np.asarray(count32.sum(axis=(2, 3))),
                               np.full((B, 1), H * W, dtype=np.float32),
                               rtol=1e-4, atol=1e-4)

    print("KERNEL_OK")
</pallas_src>

<mosaic_0001>
module attributes {stable_mosaic.version = 11 : i64} {
  func.func @_push_count_kernel(%arg0: i32, %arg1: i32, %arg2: i32, %arg3: memref<1x4x256xf32, #tpu.memory_space<vmem>>, %arg4: memref<1x2x256xf32, #tpu.memory_space<vmem>>, %arg5: memref<1x80x128xf32, #tpu.memory_space<vmem>>) attributes {dimension_semantics = [#tpu.dimension_semantics<parallel>, #tpu.dimension_semantics<parallel>, #tpu.dimension_semantics<arbitrary>], iteration_bounds = array<i64: 2, 1, 1>, scalar_prefetch = 0 : i64, scratch_operands = 0 : i64, tpu.core_type = #tpu.core_type<tc>, window_params = [{transform_indices = @transform_0, window_bounds = array<i64: 1, 4, 256>}, {transform_indices = @transform_1, window_bounds = array<i64: 1, 2, 256>}, {transform_indices = @transform_2, window_bounds = array<i64: 1, 80, 128>}]} {
    %0 = tpu.iota {dimensions = array<i32: 1>} : vector<1x256xi32>
    %c256_i32 = arith.constant 256 : i32
    %1 = arith.muli %arg2, %c256_i32 : i32
    %2 = vector.broadcast %1 : i32 to vector<1x256xi32>
    %3 = arith.addi %2, %0 : vector<1x256xi32>
    %c256_i32_0 = arith.constant 256 : i32
    %4 = vector.broadcast %c256_i32_0 : i32 to vector<1x256xi32>
    %5 = arith.cmpi slt, %3, %4 : vector<1x256xi32>
    %c0 = arith.constant 0 : index
    %c0_1 = arith.constant 0 : index
    %c0_2 = arith.constant 0 : index
    %6 = vector.load %arg4[%c0, %c0_1, %c0_2] : memref<1x2x256xf32, #tpu.memory_space<vmem>>, vector<1x2x256xf32>
    %7 = vector.shape_cast %6 : vector<1x2x256xf32> to vector<2x256xf32>
    %8 = vector.extract_strided_slice %7 {offsets = [0, 0], sizes = [1, 256], strides = [1, 1]} : vector<2x256xf32> to vector<1x256xf32>
    %cst = arith.constant 0.000000e+00 : f32
    %9 = vector.broadcast %cst : f32 to vector<1x256xf32>
    %10 = arith.select %5, %8, %9 : vector<1x256xi1>, vector<1x256xf32>
    %11 = vector.extract_strided_slice %7 {offsets = [1, 0], sizes = [1, 256], strides = [1, 1]} : vector<2x256xf32> to vector<1x256xf32>
    %cst_3 = arith.constant 0.000000e+00 : f32
    %12 = vector.broadcast %cst_3 : f32 to vector<1x256xf32>
    %13 = arith.select %5, %11, %12 : vector<1x256xi1>, vector<1x256xf32>
    %14 = math.floor %10 : vector<1x256xf32>
    %15 = arith.subf %10, %14 : vector<1x256xf32>
    %16 = arith.fptosi %14 : vector<1x256xf32> to vector<1x256xi32>
    %c0_i32 = arith.constant 0 : i32
    %17 = vector.broadcast %c0_i32 : i32 to vector<1x256xi32>
    %18 = arith.cmpi slt, %16, %17 : vector<1x256xi32>
    %c-1_i32 = arith.constant -1 : i32
    %19 = vector.broadcast %c-1_i32 : i32 to vector<1x256xi32>
    %20 = arith.subi %19, %16 : vector<1x256xi32>
    %21 = arith.select %18, %20, %16 : vector<1x256xi1>, vector<1x256xi32>
    %c16_i32 = arith.constant 16 : i32
    %22 = vector.broadcast %c16_i32 : i32 to vector<1x256xi32>
    %23 = arith.cmpi sge, %21, %22 : vector<1x256xi32>
    %c31_i32 = arith.constant 31 : i32
    %24 = vector.broadcast %c31_i32 : i32 to vector<1x256xi32>
    %25 = arith.subi %24, %21 : vector<1x256xi32>
    %26 = arith.select %23, %25, %21 : vector<1x256xi1>, vector<1x256xi32>
    %c0_i32_4 = arith.constant 0 : i32
    %c15_i32 = arith.constant 15 : i32
    %27 = vector.broadcast %c0_i32_4 : i32 to vector<1x256xi32>
    %28 = arith.maxsi %27, %26 : vector<1x256xi32>
    %29 = vector.broadcast %c15_i32 : i32 to vector<1x256xi32>
    %30 = arith.minsi %29, %28 : vector<1x256xi32>
    %31 = arith.fptosi %14 : vector<1x256xf32> to vector<1x256xi32>
    %c1_i32 = arith.constant 1 : i32
    %32 = vector.broadcast %c1_i32 : i32 to vector<1x256xi32>
    %33 = arith.addi %31, %32 : vector<1x256xi32>
    %c0_i32_5 = arith.constant 0 : i32
    %34 = vector.broadcast %c0_i32_5 : i32 to vector<1x256xi32>
    %35 = arith.cmpi slt, %33, %34 : vector<1x256xi32>
    %c-1_i32_6 = arith.constant -1 : i32
    %36 = vector.broadcast %c-1_i32_6 : i32 to vector<1x256xi32>
    %37 = arith.subi %36, %33 : vector<1x256xi32>
    %38 = arith.select %35, %37, %33 : vector<1x256xi1>, vector<1x256xi32>
    %c16_i32_7 = arith.constant 16 : i32
    %39 = vector.broadcast %c16_i32_7 : i32 to vector<1x256xi32>
    %40 = arith.cmpi sge, %38, %39 : vector<1x256xi32>
    %c31_i32_8 = arith.constant 31 : i32
    %41 = vector.broadcast %c31_i32_8 : i32 to vector<1x256xi32>
    %42 = arith.subi %41, %38 : vector<1x256xi32>
    %43 = arith.select %40, %42, %38 : vector<1x256xi1>, vector<1x256xi32>
    %c0_i32_9 = arith.constant 0 : i32
    %c15_i32_10 = arith.constant 15 : i32
    %44 = vector.broadcast %c0_i32_9 : i32 to vector<1x256xi32>
    %45 = arith.maxsi %44, %43 : vector<1x256xi32>
    %46 = vector.broadcast %c15_i32_10 : i32 to vector<1x256xi32>
    %47 = arith.minsi %46, %45 : vector<1x256xi32>
    %cst_11 = arith.constant 1.000000e+00 : f32
    %48 = vector.broadcast %cst_11 : f32 to vector<1x256xf32>
    %49 = arith.subf %48, %15 : vector<1x256xf32>
    %cst_12 = arith.constant 0.000000e+00 : f32
    %50 = vector.broadcast %cst_12 : f32 to vector<1x256xf32>
    %51 = arith.select %5, %49, %50 : vector<1x256xi1>, vector<1x256xf32>
    %cst_13 = arith.constant 0.000000e+00 : f32
    %52 = vector.broadcast %cst_13 : f32 to vector<1x256xf32>
    %53 = arith.select %5, %15, %52 : vector<1x256xi1>, vector<1x256xf32>
    %54 = tpu.iota {dimensions = array<i32: 0>} : vector<16x256xi32>
    %55 = vector.broadcast %30 : vector<1x256xi32> to vector<16x256xi32>
    %56 = arith.cmpi eq, %54, %55 : vector<16x256xi32>
    %cst_14 = arith.constant 0.000000e+00 : f32
    %57 = vector.shape_cast %51 : vector<1x256xf32> to vector<1x256xf32>
    %58 = vector.broadcast %57 : vector<1x256xf32> to vector<16x256xf32>
    %59 = vector.broadcast %cst_14 : f32 to vector<16x256xf32>
    %60 = arith.select %56, %58, %59 : vector<16x256xi1>, vector<16x256xf32>
    %61 = vector.broadcast %47 : vector<1x256xi32> to vector<16x256xi32>
    %62 = arith.cmpi eq, %54, %61 : vector<16x256xi32>
    %cst_15 = arith.constant 0.000000e+00 : f32
    %63 = vector.shape_cast %53 : vector<1x256xf32> to vector<1x256xf32>
    %64 = vector.broadcast %63 : vector<1x256xf32> to vector<16x256xf32>
    %65 = vector.broadcast %cst_15 : f32 to vector<16x256xf32>
    %66 = arith.select %62, %64, %65 : vector<16x256xi1>, vector<16x256xf32>
    %67 = arith.addf %60, %66 : vector<16x256xf32>
    %68 = math.floor %13 : vector<1x256xf32>
    %69 = arith.subf %13, %68 : vector<1x256xf32>
    %70 = arith.fptosi %68 : vector<1x256xf32> to vector<1x256xi32>
    %c0_i32_16 = arith.constant 0 : i32
    %71 = vector.broadcast %c0_i32_16 : i32 to vector<1x256xi32>
    %72 = arith.cmpi slt, %70, %71 : vector<1x256xi32>
    %c-1_i32_17 = arith.constant -1 : i32
    %73 = vector.broadcast %c-1_i32_17 : i32 to vector<1x256xi32>
    %74 = arith.subi %73, %70 : vector<1x256xi32>
    %75 = arith.select %72, %74, %70 : vector<1x256xi1>, vector<1x256xi32>
    %c16_i32_18 = arith.constant 16 : i32
    %76 = vector.broadcast %c16_i32_18 : i32 to vector<1x256xi32>
    %77 = arith.cmpi sge, %75, %76 : vector<1x256xi32>
    %c31_i32_19 = arith.constant 31 : i32
    %78 = vector.broadcast %c31_i32_19 : i32 to vector<1x256xi32>
    %79 = arith.subi %78, %75 : vector<1x256xi32>
    %80 = arith.select %77, %79, %75 : vector<1x256xi1>, vector<1x256xi32>
    %c0_i32_20 = arith.constant 0 : i32
    %c15_i32_21 = arith.constant 15 : i32
    %81 = vector.broadcast %c0_i32_20 : i32 to vector<1x256xi32>
    %82 = arith.maxsi %81, %80 : vector<1x256xi32>
    %83 = vector.broadcast %c15_i32_21 : i32 to vector<1x256xi32>
    %84 = arith.minsi %83, %82 : vector<1x256xi32>
    %85 = arith.fptosi %68 : vector<1x256xf32> to vector<1x256xi32>
    %c1_i32_22 = arith.constant 1 : i32
    %86 = vector.broadcast %c1_i32_22 : i32 to vector<1x256xi32>
    %87 = arith.addi %85, %86 : vector<1x256xi32>
    %c0_i32_23 = arith.constant 0 : i32
    %88 = vector.broadcast %c0_i32_23 : i32 to vector<1x256xi32>
    %89 = arith.cmpi slt, %87, %88 : vector<1x256xi32>
    %c-1_i32_24 = arith.constant -1 : i32
    %90 = vector.broadcast %c-1_i32_24 : i32 to vector<1x256xi32>
    %91 = arith.subi %90, %87 : vector<1x256xi32>
    %92 = arith.select %89, %91, %87 : vector<1x256xi1>, vector<1x256xi32>
    %c16_i32_25 = arith.constant 16 : i32
    %93 = vector.broadcast %c16_i32_25 : i32 to vector<1x256xi32>
    %94 = arith.cmpi sge, %92, %93 : vector<1x256xi32>
    %c31_i32_26 = arith.constant 31 : i32
    %95 = vector.broadcast %c31_i32_26 : i32 to vector<1x256xi32>
    %96 = arith.subi %95, %92 : vector<1x256xi32>
    %97 = arith.select %94, %96, %92 : vector<1x256xi1>, vector<1x256xi32>
    %c0_i32_27 = arith.constant 0 : i32
    %c15_i32_28 = arith.constant 15 : i32
    %98 = vector.broadcast %c0_i32_27 : i32 to vector<1x256xi32>
    %99 = arith.maxsi %98, %97 : vector<1x256xi32>
    %100 = vector.broadcast %c15_i32_28 : i32 to vector<1x256xi32>
    %101 = arith.minsi %100, %99 : vector<1x256xi32>
    %cst_29 = arith.constant 1.000000e+00 : f32
    %102 = vector.broadcast %cst_29 : f32 to vector<1x256xf32>
    %103 = arith.subf %102, %69 : vector<1x256xf32>
    %c128_i32 = arith.constant 128 : i32
    %104 = arith.muli %arg1, %c128_i32 : i32
    %105 = tpu.iota {dimensions = array<i32: 0>} : vector<128x256xi32>
    %106 = vector.broadcast %104 : i32 to vector<128x256xi32>
    %107 = arith.addi %106, %105 : vector<128x256xi32>
    %108 = vector.broadcast %84 : vector<1x256xi32> to vector<128x256xi32>
    %109 = arith.cmpi eq, %107, %108 : vector<128x256xi32>
    %cst_30 = arith.constant 0.000000e+00 : f32
    %110 = vector.shape_cast %103 : vector<1x256xf32> to vector<1x256xf32>
    %111 = vector.broadcast %110 : vector<1x256xf32> to vector<128x256xf32>
    %112 = vector.broadcast %cst_30 : f32 to vector<128x256xf32>
    %113 = arith.select %109, %111, %112 : vector<128x256xi1>, vector<128x256xf32>
    %114 = vector.broadcast %101 : vector<1x256xi32> to vector<128x256xi32>
    %115 = arith.cmpi eq, %107, %114 : vector<128x256xi32>
    %cst_31 = arith.constant 0.000000e+00 : f32
    %116 = vector.shape_cast %69 : vector<1x256xf32> to vector<1x256xf32>
    %117 = vector.broadcast %116 : vector<1x256xf32> to vector<128x256xf32>
    %118 = vector.broadcast %cst_31 : f32 to vector<128x256xf32>
    %119 = arith.select %115, %117, %118 : vector<128x256xi1>, vector<128x256xf32>
    %120 = arith.addf %113, %119 : vector<128x256xf32>
    %c0_32 = arith.constant 0 : index
    %c0_33 = arith.constant 0 : index
    %c0_34 = arith.constant 0 : index
    %121 = vector.load %arg3[%c0_32, %c0_33, %c0_34] : memref<1x4x256xf32, #tpu.memory_space<vmem>>, vector<1x4x256xf32>
    %122 = vector.shape_cast %121 : vector<1x4x256xf32> to vector<4x256xf32>
    %c0_i32_35 = arith.constant 0 : i32
    %123 = arith.sitofp %c0_i32_35 : i32 to f32
    %124 = vector.shape_cast %5 : vector<1x256xi1> to vector<1x256xi1>
    %125 = vector.broadcast %124 : vector<1x256xi1> to vector<4x256xi1>
    %126 = vector.broadcast %123 : f32 to vector<4x256xf32>
    %127 = arith.select %125, %122, %126 : vector<4x256xi1>, vector<4x256xf32>
    %cst_36 = arith.constant 1.000000e+00 : f32
    %128 = vector.broadcast %cst_36 : f32 to vector<1x256xf32>
    %129 = tpu.concatenate %128, %127 in 0 : vector<1x256xf32>, vector<4x256xf32> -> vector<5x256xf32>
    %130 = vector.shape_cast %129 : vector<5x256xf32> to vector<5x1x256xf32>
    %131 = vector.shape_cast %67 : vector<16x256xf32> to vector<1x16x256xf32>
    %132 = vector.broadcast %130 : vector<5x1x256xf32> to vector<5x16x256xf32>
    %133 = vector.broadcast %131 : vector<1x16x256xf32> to vector<5x16x256xf32>
    %134 = arith.mulf %132, %133 : vector<5x16x256xf32>
    %135 = vector.shape_cast %134 : vector<5x16x256xf32> to vector<80x256xf32>
    %cst_37 = arith.constant dense<0.000000e+00> : vector<80x128xf32>
    %136 = tpu.matmul %135, %120, %cst_37 {dimension_numbers = #tpu.dot_dimension_numbers<[1], [1], [0], [0], [0, 0, 1, 0], [], []>} : vector<80x256xf32>, vector<128x256xf32>, vector<80x128xf32> -> vector<80x128xf32>
    %c0_i32_38 = arith.constant 0 : i32
    %137 = arith.cmpi eq, %arg2, %c0_i32_38 : i32
    %138 = arith.extui %137 : i1 to i32
    %c0_i32_39 = arith.constant 0 : i32
    %139 = arith.cmpi ne, %138, %c0_i32_39 : i32
    scf.if %139 {
      %c0_42 = arith.constant 0 : index
      %c0_43 = arith.constant 0 : index
      %c0_44 = arith.constant 0 : index
      %143 = vector.load %arg5[%c0_42, %c0_43, %c0_44] : memref<1x80x128xf32, #tpu.memory_space<vmem>>, vector<1x80x128xf32>
      %144 = vector.shape_cast %143 : vector<1x80x128xf32> to vector<80x128xf32>
      %145 = vector.shape_cast %136 : vector<80x128xf32> to vector<1x80x128xf32>
      tpu.vector_store %arg5[%c0_42, %c0_43, %c0_44], %145 {strides = array<i32>} : memref<1x80x128xf32, #tpu.memory_space<vmem>>, vector<1x80x128xf32>,
    } else {
    }
    %c0_i32_40 = arith.constant 0 : i32
    %140 = arith.cmpi sgt, %arg2, %c0_i32_40 : i32
    %141 = arith.extui %140 : i1 to i32
    %c0_i32_41 = arith.constant 0 : i32
    %142 = arith.cmpi ne, %141, %c0_i32_41 : i32
    scf.if %142 {
      %c0_42 = arith.constant 0 : index
      %c0_43 = arith.constant 0 : index
      %c0_44 = arith.constant 0 : index
      %143 = vector.load %arg5[%c0_42, %c0_43, %c0_44] : memref<1x80x128xf32, #tpu.memory_space<vmem>>, vector<1x80x128xf32>
      %144 = vector.shape_cast %143 : vector<1x80x128xf32> to vector<80x128xf32>
      %145 = arith.addf %144, %136 : vector<80x128xf32>
      %c0_45 = arith.constant 0 : index
      %c0_46 = arith.constant 0 : index
      %c0_47 = arith.constant 0 : index
      %146 = vector.load %arg5[%c0_45, %c0_46, %c0_47] : memref<1x80x128xf32, #tpu.memory_space<vmem>>, vector<1x80x128xf32>
      %147 = vector.shape_cast %146 : vector<1x80x128xf32> to vector<80x128xf32>
      %148 = vector.shape_cast %145 : vector<80x128xf32> to vector<1x80x128xf32>
      tpu.vector_store %arg5[%c0_45, %c0_46, %c0_47], %148 {strides = array<i32>} : memref<1x80x128xf32, #tpu.memory_space<vmem>>, vector<1x80x128xf32>,
    } else {
    }
    return
  }
  func.func @transform_0(%arg0: i32, %arg1: i32, %arg2: i32) -> (i32, i32, i32) {
    %c0_i32 = arith.constant 0 : i32
    %c0_i32_0 = arith.constant 0 : i32
    return %arg0, %c0_i32, %arg2 : i32, i32, i32
  }
  func.func @transform_1(%arg0: i32, %arg1: i32, %arg2: i32) -> (i32, i32, i32) {
    %c0_i32 = arith.constant 0 : i32
    %c0_i32_0 = arith.constant 0 : i32
    return %arg0, %c0_i32, %arg2 : i32, i32, i32
  }
  func.func @transform_2(%arg0: i32, %arg1: i32, %arg2: i32) -> (i32, i32, i32) {
    %c0_i32 = arith.constant 0 : i32
    %c0_i32_0 = arith.constant 0 : i32
    return %arg0, %c0_i32, %arg1 : i32, i32, i32
  }
}

</mosaic_0001>

<bundles_post_ra>
// kernel: tpu_custom_call.1
= control target key start
LH: loop header
LB: loop body
LE: loop exit
PB: predicated region body
PF: predicated region fallthrough
CT: control target
= control target key end

     0   :  { %7 = vsyncpa [#allocation3], 0  ;;  %s1998_s0 = inlined_call_operand.hbm [shape: f32[2,4,256], index: 0, kind: input, shape index: {}]   ;;  %s1999_s1 = inlined_call_operand.hbm [shape: f32[2,2,256], index: 1, kind: input, shape index: {}]   ;;  %s2000_s2 = inlined_call_operand.hbm [shape: f32[2,80,128], index: 2, kind: output, shape index: {}]  }
   0x1   :  { %9 = vsyncpa [#allocation3 + $0x1], 0 }
   0x2   :  { %10 = vsyncpa [#allocation6], 0 }
   0x3   :  { %12 = vsyncpa [#allocation6 + $0x1], 0 }
   0x4   :  { %13 = vsyncpa [#allocation4], 0 }
   0x5   :  { %15 = vsyncpa [#allocation4 + $0x1], 0  ;;  %s1387_s9 = smov 0   ;;  %s1389_s10 = smov 0  }
   0x6   :  { %s1391_s11 = smov 0   ;;  %s1393_s12 = smov 0  }
   0x7   :  { %s1395_s13 = smov 0   ;;  %s1397_s14 = smov 0  }
   0x8 LB: > { %s1071_s15 = sadd.s32 4294967295, %s1364_s14   ;;  %s1072_s16 = sadd.s32 4294967294, %s1364_s14   ;;  %s1364_s14 = sphi %s1397_s14, %s21_s14   ;;  %s1360_s13 = sphi %s1395_s13, %s2020_s13   ;;  %s1356_s12 = sphi %s1393_s12, %s2019_s12   ;;  %s1352_s11 = sphi %s1391_s11, %s2018_s11   ;;  %s1348_s10 = sphi %s1389_s10, %s2017_s10   ;;  %s1344_s9 = sphi %s1387_s9, %s2016_s9  }
   0x9   : > { %s40_s17 = sadd.s32 1, %s1360_s13  ;;  %s49_s18 = sadd.s32 1, %s1352_s11 }
   0xa   : > { %p42_p0 = scmp.ge.s32.totalorder %s40_s17, 2  ;;  %p56_p1 = scmp.ne.s32.totalorder %s1352_s11, %s1348_s10 }
   0xb   : > { %p57_p2 = scmp.eq.s32.totalorder %s1364_s14, 0  ;;  %p62_p3 = scmp.ne.s32.totalorder %s1348_s10, %s1344_s9 }
   0xc   : > { %s2022_s17 = smov (%p42_p0, %s40_s17), 0  ;;  %p63_p5 = scmp.eq.s32.totalorder %s1071_s15, 0 }
   0xd   : > { %p1428_p4 = por %p57_p2, %p56_p1  ;;  %s44_s20 = ssub.s32 %s1360_s13, %s2022_s17 }
   0xe   : > { %p116_p6 = scmp.eq.s32.totalorder %s1071_s15, 1  ;;  %p47_p7 = scmp.eq.s32.totalorder %s44_s20, 0 }
   0xf   : > { %p1434_p8 = por %p63_p5, %p62_p3  ;;  %p122_p10 = scmp.eq.s32.totalorder %s1072_s16, 1 }
  0x10   : > { %p1438_p9 = por %p116_p6, %p56_p1  ;;  %p1164_p13 = scmp.lt.s32.totalorder %s1364_s14, 2 }
  0x11   : > { %s2004_s21 = scalar_select %p1434_p8, 1, 0 }
  0x12   : > { %s2005_s22 = scalar_select %p1438_p9, 1, 0 }
  0x13   : > { %s1443_s23 = scalar_select %p47_p7, %s1352_s11, %s49_s18  }
  0x14   : > { %p1445_p11 = por %p122_p10, %p62_p3  ;;  %s1452_s25 = sand.u32 1, %s1352_s11  }
  0x15   : > { %s1075_s26 = sshll.u32 %s1452_s25, 3  ;;  %s1087_s27 = sshll.u32 %s1360_s13, 7 }
  0x16   : > { %s2006_s24 = scalar_select %p1445_p11, 1, 0 }
  0x17   : > { %s1459_s30 = scalar_lea.hbm %s1998_s0, %s1087_s27  ;;  %s146_s3 = scalar_lea.vmem [#allocation2], %s1075_s26 }
  0x18   : > { %s156_s4 = sshll.u32 %s146_s3, 4  ;;  %p1465_p0 = pnand %p1164_p13, %p1428_p4  ;;  %s1461_s4 = int_to_ptr.vmem [resolvable:$true] %s156_s4 }
  0x19   : > { %s143_s6 = scalar_lea.sflag [#allocation3], %s1452_s25  ;;  %s1218_s7 = scalar_lea.hbm %s1459_s30, 128 }
  0x1a   : > { %p1219_p3 = scmp.ne.s32.totalorder %s1459_s30, %s1218_s7  ;;  %p1220_p5 = pneg %p1465_p0 }
  0x1b   : > { %s1223_s16 = scalar_lea.hbm %s1998_s0, 256  ;;  %p1224_p4 = scmp.lt.u32.totalorder %s1459_s30, %s1998_s0 }
  0x1c   : > { %p1221_p6 = pnand %p1220_p5, %p1219_p3  ;;  %p1225_p10 = scmp.lt.u32.totalorder %s1223_s16, %s1218_s7 }
  0x1d   : > { %p1227_p12 = scmp.lt.u32.totalorder %s1218_s7, %s1459_s30 }
  0x1e   : > { %p1222_p7 = pneg %p1221_p6  ;;  %p1226_p13 = por %p1225_p10, %p1224_p4 }
  0x20   : > { %p1228_p1 = por %p1227_p12, %p1226_p13 }
  0x22   : > { %p1229_p2 = pnand %p1228_p1, %p1222_p7 }
  0x24   : > { %1232 = shalt.err (!%p1229_p2)
}
  0x25   : > { %s1233_s20 = scalar_lea.vmem %s1461_s4, 128  ;;  %s1366_s26 = smov [#allocation2]  }
  0x26   : > { %p1234_p3 = scmp.ne.s32.totalorder %s1461_s4, %s1233_s20  ;;  %s1238_s27 = sshll.u32 %s1366_s26, 4  ;;  %s1239_s27 = int_to_ptr.vmem [resolvable:$false] %s1238_s27 }
  0x27   : > { %s1240_s28 = scalar_lea.vmem %s1239_s27, 256  ;;  %p1241_p9 = scmp.lt.s32.totalorder %s1461_s4, %s1239_s27 }
  0x28   : > { %p1236_p6 = pnand %p1234_p3, %p1220_p5  ;;  %p1242_p4 = scmp.lt.s32.totalorder %s1240_s28, %s1233_s20 }
  0x2a   : > { %p1237_p11 = pneg %p1236_p6  ;;  %p1243_p10 = por %p1242_p4, %p1241_p9 }
  0x2c   : > { %p1244_p12 = pnand %p1243_p10, %p1237_p11 }
  0x2e   : > { %1247 = shalt.err (!%p1244_p12)
}
  0x2f   : > { %1156 = dma.hbm_to_vmem [thread:$0]  (!%p1465_p0), %s1459_s30, 128, %s1461_s4, %s143_s6  }
  0x30   : > { %p2008_p1 = scmp.lt.s32.totalorder %s1364_s14, 3  ;;  %p2009_p2 = scmp.ge.s32.totalorder %s1364_s14, 1 }
  0x31   : > { %s1078_s3 = sshll.u32 %s1452_s25, 2  ;;  %s1088_s7 = sshll.u32 %s1360_s13, 6 }
  0x32   : > { %p1501_p7 = pnand %p2009_p2, %p2008_p1  ;;  %s1510_s16 = scalar_lea.hbm %s1999_s1, %s1088_s7 }
  0x33   : > { %s167_s18 = scalar_lea.vmem [#allocation5], %s1078_s3  ;;  %s164_s30 = scalar_lea.sflag [#allocation6], %s1452_s25 }
  0x34   : > { %s2010_s29 = scalar_select %p1501_p7, 1, 0 }
  0x35   : > { %s177_s19 = sshll.u32 %s167_s18, 4  ;;  %s1248_s4 = scalar_lea.hbm %s1510_s16, 64  ;;  %s178_s19 = int_to_ptr.vmem [resolvable:$true] %s177_s19 }
  0x36   : > { %p1249_p9 = scmp.ne.s32.totalorder %s1510_s16, %s1248_s4  ;;  %s1253_s26 = scalar_lea.hbm %s1999_s1, 128 }
  0x37   : > { %p1254_p3 = scmp.lt.u32.totalorder %s1510_s16, %s1999_s1  ;;  %p1255_p6 = scmp.lt.u32.totalorder %s1253_s26, %s1248_s4 }
  0x38   : > { %p1251_p11 = pnand %p1249_p9, %p1220_p5  ;;  %p1257_p10 = scmp.lt.u32.totalorder %s1248_s4, %s1510_s16 }
  0x39   : > { %p1256_p4 = por %p1255_p6, %p1254_p3 }
  0x3a   : > { %p1252_p13 = pneg %p1251_p11 }
  0x3b   : > { %p1258_p12 = por %p1257_p10, %p1256_p4 }
  0x3d   : > { %p1259_p1 = pnand %p1258_p12, %p1252_p13 }
  0x3f   : > { %1262 = shalt.err (!%p1259_p1)
}
  0x40   : > { %s1263_s25 = scalar_lea.vmem %s178_s19, 64  ;;  %s1367_s3 = smov [#allocation5]  }
  0x41   : > { %p1264_p2 = scmp.ne.s32.totalorder %s178_s19, %s1263_s25  ;;  %s1268_s7 = sshll.u32 %s1367_s3, 4  ;;  %s1269_s7 = int_to_ptr.vmem [resolvable:$false] %s1268_s7 }
  0x42   : > { %s1270_s8 = scalar_lea.vmem %s1269_s7, 128  ;;  %p1271_p8 = scmp.lt.s32.totalorder %s178_s19, %s1269_s7 }
  0x43   : > { %p1266_p9 = pnand %p1264_p2, %p1220_p5  ;;  %p1272_p7 = scmp.lt.s32.totalorder %s1270_s8, %s1263_s25 }
  0x45   : > { %p1267_p11 = pneg %p1266_p9  ;;  %p1273_p3 = por %p1272_p7, %p1271_p8 }
  0x47   : > { %p1274_p6 = pnand %p1273_p3, %p1267_p11 }
  0x49   : > { %1277 = shalt.err (!%p1274_p6)
}
  0x4a   : > { %1159 = dma.hbm_to_vmem [thread:$0]  (!%p1465_p0), %s1510_s16, 64, %s178_s19, %s164_s30  }
  0x4b   : > { %p2011_p13 = scmp.ne.s32.totalorder %s2010_s29, 0 }
  0x4c   : > { %s1535_s15 = sand.u32 (!%p2011_p13), 1, %s1348_s10   ;;  %p2012_p5 = scmp.ne.s32.totalorder (!%p2011_p13), %s2004_s21, 0 }
  0x4d   : > { %186 = sbr.rel (%p2011_p13) target bundleno = 432 (0x1b0), region = 28  ;;  %s1082_s18 = sshll.u32 (!%p2011_p13), %s1535_s15, 3 }
  0x4e   : > { %s189_s4 = scalar_lea.sflag (!%p2011_p13), [#allocation3], %s1535_s15  ;;  %s192_s6 = scalar_lea.vmem (!%p2011_p13), [#allocation2], %s1082_s18 }
  0x54   : > { %1331 = dma.done.wait (%p2012_p5), %s189_s4, 128  }
  0x55   : > { %1333 = vsyncadd (%p2012_p5), %s189_s4, 4294967168  ;;  %s1083_s5 = sshll.u32 %s1535_s15, 2  ;;  %s198_s29 = scalar_lea.sflag [#allocation6], %s1535_s15 }
  0x56   : > { %s201_s16 = scalar_lea.vmem [#allocation5], %s1083_s5 }
  0x57   : > { %1335 = dma.done.wait (%p2012_p5), %s198_s29, 64  }
  0x58   : > { %1337 = vsyncadd (%p2012_p5), %s198_s29, 4294967232  ;;  %v240_v0 = vlaneseq  ;;  %v1368_v2 = vmov 1966171168   ;;  %vm663_vm0 = vcmask 1040384   ;;  %v238_v6 = vld [vmem:[%s201_s16] sm:$0xf] }
  0x59   : > { %v671_v3 = vunpack.c.l.s4 %v1368_v2  ;;  %v647_v15 = vld [vmem:[%s192_s6] sm:$0xff]  ;;  %s1137_s21 = smul.u32 80, %s1535_s15  ;;  %p2013_p0 = scmp.ne.s32.totalorder %s2005_s22, 0 }
  0x5a   : > { %v1549_v1 = vshrl.u32 %v240_v0, 7  ;;  %v653_v26 = vcombine.high %v647_v15, %v647_v15  ;;  %v659_v27 = vrot.slane %v647_v15, 7  ;;  %s1146_s20 = smul.u32 1280, %s1356_s12  ;;  %s942_s12 = scalar_lea.sflag [#allocation4], %s1535_s15 }
  0x5b   : > { %v672_v10 = vunpack.c.0.s8 %v671_v3  ;;  %s226_s19 = scalar_lea.vmem [#allocation7], %s1137_s21  ;;  %s1369_s3 = smov [#allocation7]  }
  0x5c   : > { %v258_v4 = vsub.s32 3, %v1549_v1  ;;  %v1553_v5 = vsub.s32 1, %v1549_v1  ;;  %v1556_v7 = vsub.s32 0, %v1549_v1  ;;  %v1559_v8 = vadd.s32 8, %v1549_v1  ;;  %s956_s30 = sshll.u32 %s226_s19, 4  ;;  %s1949_s28 = scalar_lea.hbm %s2000_s2, %s1146_s20  ;;  %s1944_s30 = int_to_ptr.vmem [resolvable:$true] %s956_s30 }
  0x5d   : > { %v1562_v9 = vadd.s32 16, %v1549_v1  ;;  %v1566_v13 = vadd.s32 24, %v1549_v1  ;;  %v1569_v14 = vadd.s32 32, %v1549_v1  ;;  %v1572_v16 = vadd.s32 40, %v1549_v1  ;;  %s1278_s25 = scalar_lea.vmem %s1944_s30, 1280  ;;  %s1282_s7 = sshll.u32 %s1369_s3, 4  ;;  %s1283_s7 = int_to_ptr.vmem [resolvable:$false] %s1282_s7 }
  0x5e   : > { %v259_v11 = vrot.slane %v238_v6, %v258_v4  ;;  %v255_v12 = vrot.slane %v238_v6, %v1553_v5  ;;  %v1575_v17 = vadd.s32 48, %v1549_v1  ;;  %v1578_v18 = vadd.s32 56, %v1549_v1  ;;  %p1279_p8 = scmp.ne.s32.totalorder %s1944_s30, %s1278_s25  ;;  %s1284_s8 = scalar_lea.vmem %s1283_s7, 2560 }
  0x5f   : > { %v246_v19 = vsub.s32 2, %v1549_v1  ;;  %v1582_v22 = vadd.s32 64, %v1549_v1  ;;  %v1585_v23 = vadd.s32 72, %v1549_v1  ;;  %v1588_v24 = vadd.s32 80, %v1549_v1  ;;  %p1285_p10 = scmp.lt.s32.totalorder %s1944_s30, %s1283_s7  ;;  %p1286_p12 = scmp.lt.s32.totalorder %s1284_s8, %s1278_s25 }
  0x60   : > { %v374_v20 = vfloor.f32 %v259_v11  ;;  %v373_v21 = vfloor.f32 %v255_v12  ;;  %v1593_v31 = vadd.s32 88, %v1549_v1  ;;  %v1596_v32 = vadd.s32 96, %v1549_v1  ;;  %p1280_p7 = pnand %p1279_p8, %p2013_p0 }
  0x61   : > { %v1590_v25 = vrot.slane %v238_v6, %v246_v19  ;;  %v1599_v33 = vadd.s32 104, %v1549_v1  ;;  %v1602_v34 = vadd.s32 112, %v1549_v1  ;;  %v1605_v35 = vadd.s32 120, %v1549_v1  ;;  %p1287_p1 = por %p1286_p12, %p1285_p10 }
  0x62   : > { %v376_v28 = vsub.f32 %v259_v11, %v374_v20  ;;  %v1144_v29 = vtrunc.f32 %v374_v20  ;;  %v1142_v30 = vtrunc.f32 %v373_v21  ;;  %v375_v37 = vsub.f32 %v255_v12, %v373_v21  ;;  %p1281_p4 = pneg %p1280_p7 }
  0x63   : > { %v1608_v39 = vsub.s32 %v672_v10, %v1549_v1  ;;  %v265_v40 = vfloor.f32 %v1590_v25  ;;  %v1611_v41 = vrot.slane %v653_v26, 7  ;;  %v1614_v42 = vsel %vm663_vm0, 1.0, %v659_v27 }
  0x64   : > { %v1145_v36 = vcvt.f32.s32 %v1144_v29  ;;  %v1143_v38 = vcvt.f32.s32 %v1142_v30  ;;  %v1617_v43 = vrot.slane %v238_v6, %v1556_v7  ;;  %v422_v46 = vsub.f32 1.0, %v376_v28  ;;  %p1288_p2 = pnand %p1287_p1, %p1281_p4 }
  0x65   : > { %v1620_v47 = vrot.slane %v376_v28, %v1556_v7  ;;  %v421_v52 = vsub.f32 1.0, %v375_v37  ;;  %v1623_v60 = vrot.slane %v375_v37, %v1556_v7  ;;  %v1140_v63 = vtrunc.f32 %v265_v40 }
  0x66   : > { %vm380_vm1 = vcmp.lt.s32.totalorder %v1145_v36, 0  ;;  %v382_v44 = vsub.s32 4294967295, %v1145_v36  ;;  %v400_v45 = vadd.s32 1, %v1145_v36  ;;  %vm379_vm2 = vcmp.lt.s32.totalorder %v1143_v38, 0 }
  0x67   : > { %v381_v48 = vsub.s32 4294967295, %v1143_v38  ;;  %v399_v49 = vadd.s32 1, %v1143_v38  ;;  %v1628_v11 = vrot.slane %v422_v46, %v1556_v7  ;;  %v1637_v26 = vrot.slane %v421_v52, %v1556_v7 }
  0x68   : > { %v384_v50 = vsel %vm380_vm1, %v382_v44, %v1145_v36  ;;  %vm402_vm3 = vcmp.lt.s32.totalorder %v400_v45, 0  ;;  %v404_v51 = vsub.s32 4294967295, %v400_v45 }
  0x69   : > { %vm386_vm4 = vcmp.ge.s32.totalorder %v384_v50, 16  ;;  %v388_v53 = vsub.s32 31, %v384_v50  ;;  %v383_v54 = vsel %vm379_vm2, %v381_v48, %v1143_v38  ;;  %vm401_vm5 = vcmp.lt.s32.totalorder %v399_v49, 0 }
  0x6a   : > { %v406_v55 = vsel %vm402_vm3, %v404_v51, %v400_v45  ;;  %vm385_vm6 = vcmp.ge.s32.totalorder %v383_v54, 16  ;;  %v387_v56 = vsub.s32 31, %v383_v54  ;;  %v403_v57 = vsub.s32 4294967295, %v399_v49 }
  0x6b   : > { %v390_v58 = vsel %vm386_vm4, %v388_v53, %v384_v50  ;;  %vm408_vm7 = vcmp.ge.s32.totalorder %v406_v55, 16  ;;  %v410_v59 = vsub.s32 31, %v406_v55 }
  0x6c   : > { %vm393_vm8 = vcmp.gt.s32.totalorder %v390_v58, 0  ;;  %v389_v61 = vsel %vm385_vm6, %v387_v56, %v383_v54  ;;  %v405_v62 = vsel %vm401_vm5, %v403_v57, %v399_v49 }
  0x6d   : > { %v394_v0 = vsel %vm393_vm8, %v390_v58, 0  ;;  %v412_v2 = vsel %vm408_vm7, %v410_v59, %v406_v55  ;;  %vm391_vm9 = vcmp.gt.s32.totalorder %v389_v61, 0  ;;  %vm407_vm10 = vcmp.ge.s32.totalorder %v405_v62, 16 }
  0x6e   : > { %vm397_vm11 = vcmp.lt.s32.totalorder %v394_v0, 15  ;;  %vm415_vm12 = vcmp.gt.s32.totalorder %v412_v2, 0  ;;  %v392_v3 = vsel %vm391_vm9, %v389_v61, 0  ;;  %v409_v4 = vsub.s32 31, %v405_v62 }
  0x6f   : > { %v398_v6 = vsel %vm397_vm11, %v394_v0, 15  ;;  %v416_v10 = vsel %vm415_vm12, %v412_v2, 0  ;;  %vm395_vm13 = vcmp.lt.s32.totalorder %v392_v3, 15  ;;  %v1681_v61 = vcvt.f32.s32 %v1140_v63 }
  0x70   : > { %vm419_vm14 = vcmp.lt.s32.totalorder %v416_v10, 15  ;;  %v1631_v12 = vrot.slane %v398_v6, %v1556_v7  ;;  %v396_v15 = vsel %vm395_vm13, %v392_v3, 15  ;;  %v411_v19 = vsel %vm407_vm10, %v409_v4, %v405_v62 }
  0x71   : > { %v420_v20 = vsel %vm419_vm14, %v416_v10, 15  ;;  %vm413_vm15 = vcmp.gt.s32.totalorder %v411_v19, 0  ;;  %v1634_v21 = vrot.slane %v396_v15, %v1556_v7 }
  0x72   : > { %vm464_vm1 = vcmp.eq.s32.totalorder %v1549_v1, %v1631_v12  ;;  %vm466_vm2 = vcmp.eq.s32.totalorder %v1559_v8, %v1631_v12  ;;  %v1644_v27 = vrot.slane %v420_v20, %v1556_v7  ;;  %v414_v28 = vsel %vm413_vm15, %v411_v19, 0 }
  0x73   : > { %v504_v29 = vsel %vm464_vm1, %v1628_v11, 0.0  ;;  %v506_v30 = vsel %vm466_vm2, %v1628_v11, 0.0  ;;  %vm417_vm3 = vcmp.lt.s32.totalorder %v414_v28, 15  ;;  %vm463_vm4 = vcmp.eq.s32.totalorder %v1549_v1, %v1634_v21 }
  0x74   : > { %vm544_vm5 = vcmp.eq.s32.totalorder %v1549_v1, %v1644_v27  ;;  %vm546_vm6 = vcmp.eq.s32.totalorder %v1559_v8, %v1644_v27  ;;  %v418_v36 = vsel %vm417_vm3, %v414_v28, 15  ;;  %vm465_vm7 = vcmp.eq.s32.totalorder %v1559_v8, %v1634_v21 }
  0x75   : > { %v584_v37 = vsel %vm544_vm5, %v1620_v47, 0.0  ;;  %v586_v38 = vsel %vm546_vm6, %v1620_v47, 0.0  ;;  %v503_v44 = vsel %vm463_vm4, %v1637_v26, 0.0  ;;  %v505_v45 = vsel %vm465_vm7, %v1637_v26, 0.0 }
  0x76   : > { %v616_v46 = vadd.f32 %v584_v37, %v504_v29  ;;  %v618_v48 = vadd.f32 %v586_v38, %v506_v30  ;;  %v1661_v49 = vrot.slane %v418_v36, %v1556_v7  ;;  %vm468_vm8 = vcmp.eq.s32.totalorder %v1562_v9, %v1631_v12 }
  0x77   : > { %vm470_vm9 = vcmp.eq.s32.totalorder %v1566_v13, %v1631_v12  ;;  %v508_v50 = vsel %vm468_vm8, %v1628_v11, 0.0  ;;  %vm548_vm10 = vcmp.eq.s32.totalorder %v1562_v9, %v1644_v27  ;;  %vm550_vm11 = vcmp.eq.s32.totalorder %v1566_v13, %v1644_v27 }
  0x78   : > { %v1089_v51 = vpack.c.bf16 %v618_v48, %v616_v46  ;;  %vm543_vm12 = vcmp.eq.s32.totalorder %v1549_v1, %v1661_v49  ;;  %vm545_vm13 = vcmp.eq.s32.totalorder %v1559_v8, %v1661_v49  ;;  %v510_v52 = vsel %vm470_vm9, %v1628_v11, 0.0 }
  0x79   : > { %v583_v53 = vsel %vm543_vm12, %v1623_v60, 0.0  ;;  %v585_v54 = vsel %vm545_vm13, %v1623_v60, 0.0  ;;  %v588_v55 = vsel %vm548_vm10, %v1620_v47, 0.0  ;;  %v590_v56 = vsel %vm550_vm11, %v1620_v47, 0.0 }
  0x7a   : > { %1090 = vmatprep.subr.bf16.mxu0 %v1089_v51  ;;  %1121 = vmatprep.subr.bf16.mxu1 %v1089_v51  ;;  %v615_v57 = vadd.f32 %v583_v53, %v503_v44  ;;  %v617_v58 = vadd.f32 %v585_v54, %v505_v45  ;;  %v620_v59 = vadd.f32 %v588_v55, %v508_v50  ;;  %vm271_vm9 = vcmp.lt.s32.totalorder %v1681_v61, 0 }
  0x7b   : > { %v622_v62 = vadd.f32 %v590_v56, %v510_v52  ;;  %vm467_vm14 = vcmp.eq.s32.totalorder %v1562_v9, %v1634_v21  ;;  %vm469_vm15 = vcmp.eq.s32.totalorder %v1566_v13, %v1634_v21  ;;  %vm547_vm1 = vcmp.eq.s32.totalorder %v1562_v9, %v1661_v49 }
  0x7c   : > { %v1091_v0 = vpack.c.bf16 %v617_v58, %v615_v57  ;;  %v507_v2 = vsel %vm467_vm14, %v1637_v26, 0.0  ;;  %v509_v3 = vsel %vm469_vm15, %v1637_v26, 0.0  ;;  %vm549_vm2 = vcmp.eq.s32.totalorder %v1566_v13, %v1661_v49 }
  0x7d   : > { %v1093_v63 = vpack.c.bf16 %v622_v62, %v620_v59  ;;  %v587_v4 = vsel %vm547_vm1, %v1623_v60, 0.0  ;;  %v589_v6 = vsel %vm549_vm2, %v1623_v60, 0.0  ;;  %vm472_vm3 = vcmp.eq.s32.totalorder %v1569_v14, %v1631_v12 }
  0x7e   : > { %1092 = vmatpush1.bf16.xpose.msra.mxu0 %v1091_v0  ;;  %1129 = vmatpush1.bf16.xpose.msra.mxu1 %v1091_v0  ;;  %v619_v10 = vadd.f32 %v587_v4, %v507_v2  ;;  %v621_v9 = vadd.f32 %v589_v6, %v509_v3  ;;  %vm474_vm4 = vcmp.eq.s32.totalorder %v1572_v16, %v1631_v12  ;;  %v512_v15 = vsel %vm472_vm3, %v1628_v11, 0.0 }
  0x7f   : > { %1094 = vmatprep.subr.bf16.mxu0 %v1093_v63  ;;  %1122 = vmatprep.subr.bf16.mxu1 %v1093_v63  ;;  %v514_v13 = vsel %vm474_vm4, %v1628_v11, 0.0  ;;  %vm552_vm5 = vcmp.eq.s32.totalorder %v1569_v14, %v1644_v27  ;;  %vm554_vm6 = vcmp.eq.s32.totalorder %v1572_v16, %v1644_v27  ;;  %vm471_vm7 = vcmp.eq.s32.totalorder %v1569_v14, %v1634_v21 }
  0x80   : > { %v1095_v19 = vpack.c.bf16 %v621_v9, %v619_v10  ;;  %v592_v20 = vsel %vm552_vm5, %v1620_v47, 0.0  ;;  %v594_v28 = vsel %vm554_vm6, %v1620_v47, 0.0  ;;  %vm473_vm8 = vcmp.eq.s32.totalorder %v1572_v16, %v1634_v21 }
  0x81   : > { %v624_v29 = vadd.f32 %v592_v20, %v512_v15  ;;  %v626_v30 = vadd.f32 %v594_v28, %v514_v13  ;;  %v511_v36 = vsel %vm471_vm7, %v1637_v26, 0.0  ;;  %v513_v37 = vsel %vm473_vm8, %v1637_v26, 0.0 }
  0x82   : > { %vm551_vm10 = vcmp.eq.s32.totalorder %v1569_v14, %v1661_v49  ;;  %vm553_vm11 = vcmp.eq.s32.totalorder %v1572_v16, %v1661_v49  ;;  %vm476_vm12 = vcmp.eq.s32.totalorder %v1575_v17, %v1631_v12  ;;  %vm478_vm13 = vcmp.eq.s32.totalorder %v1578_v18, %v1631_v12 }
  0x83   : > { %v1097_v38 = vpack.c.bf16 %v626_v30, %v624_v29  ;;  %v591_v44 = vsel %vm551_vm10, %v1623_v60, 0.0  ;;  %v593_v45 = vsel %vm553_vm11, %v1623_v60, 0.0  ;;  %v516_v46 = vsel %vm476_vm12, %v1628_v11, 0.0 }
  0x84   : > { %v623_v48 = vadd.f32 %v591_v44, %v511_v36  ;;  %v625_v50 = vadd.f32 %v593_v45, %v513_v37  ;;  %v518_v14 = vsel %vm478_vm13, %v1628_v11, 0.0  ;;  %vm556_vm14 = vcmp.eq.s32.totalorder %v1575_v17, %v1644_v27 }
  0x85   : > { %vm558_vm15 = vcmp.eq.s32.totalorder %v1578_v18, %v1644_v27  ;;  %v596_v16 = vsel %vm556_vm14, %v1620_v47, 0.0  ;;  %vm475_vm1 = vcmp.eq.s32.totalorder %v1575_v17, %v1634_v21  ;;  %vm477_vm2 = vcmp.eq.s32.totalorder %v1578_v18, %v1634_v21 }
  0x86   : > { %1096 = vmatpush1.bf16.xpose.msra.mxu0 %v1095_v19  ;;  %1130 = vmatpush1.bf16.xpose.msra.mxu1 %v1095_v19  ;;  %v598_v51 = vsel %vm558_vm15, %v1620_v47, 0.0  ;;  %v628_v52 = vadd.f32 %v596_v16, %v516_v46  ;;  %v515_v53 = vsel %vm475_vm1, %v1637_v26, 0.0  ;;  %v273_v54 = vsub.s32 4294967295, %v1681_v61 }
  0x87   : > { %1098 = vmatprep.subr.bf16.mxu0 %v1097_v38  ;;  %1123 = vmatprep.subr.bf16.mxu1 %v1097_v38  ;;  %v630_v55 = vadd.f32 %v598_v51, %v518_v14  ;;  %v517_v56 = vsel %vm477_vm2, %v1637_v26, 0.0  ;;  %vm555_vm3 = vcmp.eq.s32.totalorder %v1575_v17, %v1661_v49  ;;  %vm557_vm4 = vcmp.eq.s32.totalorder %v1578_v18, %v1661_v49 }
  0x88   : > { %v595_v57 = vsel %vm555_vm3, %v1623_v60, 0.0  ;;  %v597_v58 = vsel %vm557_vm4, %v1623_v60, 0.0  ;;  %vm480_vm5 = vcmp.eq.s32.totalorder %v1582_v22, %v1631_v12  ;;  %vm482_vm6 = vcmp.eq.s32.totalorder %v1585_v23, %v1631_v12 }
  0x89   : > { %v1099_v59 = vpack.c.bf16 %v625_v50, %v623_v48  ;;  %v1101_v62 = vpack.c.bf16 %v630_v55, %v628_v52  ;;  %v627_v0 = vadd.f32 %v595_v57, %v515_v53  ;;  %v520_v2 = vsel %vm480_vm5, %v1628_v11, 0.0 }
  0x8a   : > { %v629_v3 = vadd.f32 %v597_v58, %v517_v56  ;;  %v522_v17 = vsel %vm482_vm6, %v1628_v11, 0.0  ;;  %vm560_vm7 = vcmp.eq.s32.totalorder %v1582_v22, %v1644_v27  ;;  %vm562_vm8 = vcmp.eq.s32.totalorder %v1585_v23, %v1644_v27 }
  0x8b   : > { %v600_v18 = vsel %vm560_vm7, %v1620_v47, 0.0  ;;  %v602_v63 = vsel %vm562_vm8, %v1620_v47, 0.0  ;;  %vm479_vm10 = vcmp.eq.s32.totalorder %v1582_v22, %v1634_v21  ;;  %vm481_vm11 = vcmp.eq.s32.totalorder %v1585_v23, %v1634_v21 }
  0x8c   : > { %v632_v4 = vadd.f32 %v600_v18, %v520_v2  ;;  %v634_v6 = vadd.f32 %v602_v63, %v522_v17  ;;  %v1764_v10 = vsel %vm271_vm9, %v273_v54, %v1681_v61  ;;  %v1768_v9 = vsel %vm663_vm0, 1.0, %v1611_v41 }
  0x8d   : > { %vm559_vm12 = vcmp.eq.s32.totalorder %v1582_v22, %v1661_v49  ;;  %vm561_vm13 = vcmp.eq.s32.totalorder %v1585_v23, %v1661_v49  ;;  %vm484_vm14 = vcmp.eq.s32.totalorder %v1588_v24, %v1631_v12  ;;  %vm486_vm15 = vcmp.eq.s32.totalorder %v1593_v31, %v1631_v12 }
  0x8e   : > { %1100 = vmatpush1.bf16.xpose.msra.mxu0 %v1099_v59  ;;  %1131 = vmatpush1.bf16.xpose.msra.mxu1 %v1099_v59  ;;  %v519_v15 = vsel %vm479_vm10, %v1637_v26, 0.0  ;;  %v521_v13 = vsel %vm481_vm11, %v1637_v26, 0.0  ;;  %v599_v41 = vsel %vm559_vm12, %v1623_v60, 0.0  ;;  %v601_v19 = vsel %vm561_vm13, %v1623_v60, 0.0 }
  0x8f   : > { %1102 = vmatprep.subr.bf16.mxu0 %v1101_v62  ;;  %1124 = vmatprep.subr.bf16.mxu1 %v1101_v62  ;;  %v1103_v22 = vpack.c.bf16 %v629_v3, %v627_v0  ;;  %v524_v23 = vsel %vm484_vm14, %v1628_v11, 0.0  ;;  %v526_v20 = vsel %vm486_vm15, %v1628_v11, 0.0  ;;  %vm564_vm0 = vcmp.eq.s32.totalorder %v1588_v24, %v1644_v27 }
  0x90   : > { %vm566_vm9 = vcmp.eq.s32.totalorder %v1593_v31, %v1644_v27  ;;  %v604_v28 = vsel %vm564_vm0, %v1620_v47, 0.0  ;;  %vm483_vm1 = vcmp.eq.s32.totalorder %v1588_v24, %v1634_v21  ;;  %vm485_vm2 = vcmp.eq.s32.totalorder %v1593_v31, %v1634_v21 }
  0x91   : > { %v1105_v29 = vpack.c.bf16 %v634_v6, %v632_v4  ;;  %v631_v30 = vadd.f32 %v599_v41, %v519_v15  ;;  %v633_v36 = vadd.f32 %v601_v19, %v521_v13  ;;  %v606_v37 = vsel %vm566_vm9, %v1620_v47, 0.0 }
  0x92   : > { %v523_v38 = vsel %vm483_vm1, %v1637_v26, 0.0  ;;  %v525_v44 = vsel %vm485_vm2, %v1637_v26, 0.0  ;;  %vm563_vm3 = vcmp.eq.s32.totalorder %v1588_v24, %v1661_v49  ;;  %vm565_vm4 = vcmp.eq.s32.totalorder %v1593_v31, %v1661_v49 }
  0x93   : > { %v636_v45 = vadd.f32 %v604_v28, %v524_v23  ;;  %v638_v46 = vadd.f32 %v606_v37, %v526_v20  ;;  %v603_v48 = vsel %vm563_vm3, %v1623_v60, 0.0  ;;  %v605_v50 = vsel %vm565_vm4, %v1623_v60, 0.0 }
  0x94   : > { %vm488_vm5 = vcmp.eq.s32.totalorder %v1596_v32, %v1631_v12  ;;  %vm490_vm6 = vcmp.eq.s32.totalorder %v1599_v33, %v1631_v12  ;;  %v1809_v14 = vsub.f32 %v1590_v25, %v265_v40  ;;  %v264_v24 = vfloor.f32 %v1617_v43 }
  0x95   : > { %v635_v31 = vadd.f32 %v603_v48, %v523_v38  ;;  %v637_v16 = vadd.f32 %v605_v50, %v525_v44  ;;  %vm568_vm7 = vcmp.eq.s32.totalorder %v1596_v32, %v1644_v27  ;;  %vm277_vm8 = vcmp.ge.s32.totalorder %v1764_v10, 16 }
  0x96   : > { %1104 = vmatpush1.bf16.xpose.msra.mxu0 %v1103_v22  ;;  %1132 = vmatpush1.bf16.xpose.msra.mxu1 %v1103_v22  ;;  %v1107_v51 = vpack.c.bf16 %v633_v36, %v631_v30  ;;  %vm570_vm10 = vcmp.eq.s32.totalorder %v1599_v33, %v1644_v27  ;;  %vm487_vm11 = vcmp.eq.s32.totalorder %v1596_v32, %v1634_v21  ;;  %v279_v25 = vsub.s32 31, %v1764_v10 }
  0x97   : > { %1106 = vmatprep.subr.bf16.mxu0 %v1105_v29  ;;  %1125 = vmatprep.subr.bf16.mxu1 %v1105_v29  ;;  %v1109_v40 = vpack.c.bf16 %v638_v46, %v636_v45  ;;  %v528_v52 = vsel %vm488_vm5, %v1628_v11, 0.0  ;;  %v530_v53 = vsel %vm490_vm6, %v1628_v11, 0.0  ;;  %vm489_vm12 = vcmp.eq.s32.totalorder %v1599_v33, %v1634_v21 }
  0x98   : > { %v608_v54 = vsel %vm568_vm7, %v1620_v47, 0.0  ;;  %vm567_vm13 = vcmp.eq.s32.totalorder %v1596_v32, %v1661_v49  ;;  %vm569_vm14 = vcmp.eq.s32.totalorder %v1599_v33, %v1661_v49  ;;  %vm492_vm15 = vcmp.eq.s32.totalorder %v1602_v34, %v1631_v12 }
  0x99   : > { %v1111_v55 = vpack.c.bf16 %v637_v16, %v635_v31  ;;  %v610_v56 = vsel %vm570_vm10, %v1620_v47, 0.0  ;;  %v527_v57 = vsel %vm487_vm11, %v1637_v26, 0.0  ;;  %vm494_vm0 = vcmp.eq.s32.totalorder %v1605_v35, %v1631_v12 }
  0x9a   : > { %v529_v58 = vsel %vm489_vm12, %v1637_v26, 0.0  ;;  %v607_v59 = vsel %vm567_vm13, %v1623_v60, 0.0  ;;  %v609_v32 = vsel %vm569_vm14, %v1623_v60, 0.0  ;;  %vm572_vm9 = vcmp.eq.s32.totalorder %v1602_v34, %v1644_v27 }
  0x9b   : > { %v640_v33 = vadd.f32 %v608_v54, %v528_v52  ;;  %v532_v62 = vsel %vm492_vm15, %v1628_v11, 0.0  ;;  %vm574_vm1 = vcmp.eq.s32.totalorder %v1605_v35, %v1644_v27  ;;  %v612_v0 = vsel %vm572_vm9, %v1620_v47, 0.0 }
  0x9c   : > { %v534_v2 = vsel %vm494_vm0, %v1628_v11, 0.0  ;;  %v614_v12 = vsel %vm574_vm1, %v1620_v47, 0.0  ;;  %vm491_vm2 = vcmp.eq.s32.totalorder %v1602_v34, %v1634_v21  ;;  %vm493_vm3 = vcmp.eq.s32.totalorder %v1605_v35, %v1634_v21 }
  0x9d   : > { %v642_v3 = vadd.f32 %v610_v56, %v530_v53  ;;  %v639_v17 = vadd.f32 %v607_v59, %v527_v57  ;;  %v641_v18 = vadd.f32 %v609_v32, %v529_v58  ;;  %vm571_vm4 = vcmp.eq.s32.totalorder %v1602_v34, %v1661_v49 }
  0x9e   : > { %1108 = vmatpush1.bf16.xpose.msra.mxu0 %v1107_v51  ;;  %1133 = vmatpush1.bf16.xpose.msra.mxu1 %v1107_v51  ;;  %v644_v27 = vadd.f32 %v612_v0, %v532_v62  ;;  %vm573_vm5 = vcmp.eq.s32.totalorder %v1605_v35, %v1661_v49  ;;  %v281_v47 = vsel %vm277_vm8, %v279_v25, %v1764_v10  ;;  %v291_v11 = vadd.s32 1, %v1681_v61 }
  0x9f   : > { %1110 = vmatprep.subr.bf16.mxu0 %v1109_v40  ;;  %1126 = vmatprep.subr.bf16.mxu1 %v1109_v40  ;;  %v646_v21 = vadd.f32 %v614_v12, %v534_v2  ;;  %v531_v63 = vsel %vm491_vm2, %v1637_v26, 0.0  ;;  %v533_v4 = vsel %vm493_vm3, %v1637_v26, 0.0  ;;  %vm284_vm6 = vcmp.gt.s32.totalorder %v281_v47, 0 }
  0xa0   : > { %v611_v34 = vsel %vm571_vm4, %v1623_v60, 0.0  ;;  %v285_v6 = vsel %vm284_vm6, %v281_v47, 0  ;;  %vm293_vm7 = vcmp.lt.s32.totalorder %v291_v11, 0  ;;  %v295_v15 = vsub.s32 4294967295, %v291_v11 }
  0xa1   : > { %v613_v35 = vsel %vm573_vm5, %v1623_v60, 0.0  ;;  %vm288_vm10 = vcmp.lt.s32.totalorder %v285_v6, 15  ;;  %v313_v49 = vsub.f32 1.0, %v1809_v14  ;;  %v668_v61 = vcombine.low %v1614_v42, %v1768_v9 }
  0xa2   : > { %v1113_v10 = vpack.c.bf16 %v642_v3, %v640_v33  ;;  %v1115_v13 = vpack.c.bf16 %v641_v18, %v639_v17  ;;  %v289_v41 = vsel %vm288_vm10, %v285_v6, 15  ;;  %v297_v19 = vsel %vm293_vm7, %v295_v15, %v291_v11 }
  0xa3   : > { %vm299_vm8 = vcmp.ge.s32.totalorder %v297_v19, 16  ;;  %v301_v26 = vsub.s32 31, %v297_v19  ;;  %v328_v22 = vrot.slane %v289_v41, %v1556_v7  ;;  %v676_v23 = vrot.slane %v668_v61, %v1608_v39 }
  0xa4   : > { %v1117_v20 = vpack.c.bf16 %v646_v21, %v644_v27  ;;  %v643_v28 = vadd.f32 %v611_v34, %v531_v63  ;;  %v645_v29 = vadd.f32 %v613_v35, %v533_v4  ;;  %v1138_v60 = vtrunc.f32 %v264_v24 }
  0xa5   : > { %v303_v30 = vsel %vm299_vm8, %v301_v26, %v297_v19  ;;  %v340_v36 = vrot.slane %v313_v49, %v1556_v7  ;;  %v1877_v37 = vrot.slane %v676_v23, %v1608_v39  ;;  %v1882_v38 = vsub.f32 %v1617_v43, %v264_v24 }
  0xa6   : > { %1112 = vmatpush1.bf16.xpose.msra.mxu0 %v1111_v55  ;;  %1134 = vmatpush1.bf16.xpose.msra.mxu1 %v1111_v55  ;;  %vm306_vm11 = vcmp.gt.s32.totalorder %v303_v30, 0  ;;  %vm330_vm12 = vcmp.eq.s32.totalorder %v1549_v1, %v328_v22  ;;  %v364_v44 = vrot.slane %v1809_v14, %v1556_v7  ;;  %v1139_v45 = vcvt.f32.s32 %v1138_v60 }
  0xa7   : > { %1114 = vmatprep.subr.bf16.mxu0 %v1113_v10  ;;  %1127 = vmatprep.subr.bf16.mxu1 %v1113_v10  ;;  %v307_v46 = vsel %vm306_vm11, %v303_v30, 0  ;;  %v684_v48 = vcombine.high %v676_v23, %v676_v23  ;;  %vm332_vm13 = vcmp.eq.s32.totalorder %v1559_v8, %v328_v22  ;;  %v1890_v50 = vcombine.high %v1877_v37, %v1877_v37 }
  0xa8   : > { %vm310_vm14 = vcmp.lt.s32.totalorder %v307_v46, 15  ;;  %vm270_vm15 = vcmp.lt.s32.totalorder %v1139_v45, 0  ;;  %v272_v43 = vsub.s32 4294967295, %v1139_v45  ;;  %v290_v24 = vadd.s32 1, %v1139_v45 }
  0xa9   : > { %v311_v31 = vsel %vm310_vm14, %v307_v46, 15  ;;  %v342_v16 = vsel %vm330_vm12, %v340_v36, 0.0  ;;  %v715_v14 = vrot.slane %v1877_v37, %v1553_v5  ;;  %v312_v51 = vsub.f32 1.0, %v1882_v38 }
  0xaa   : > { %v352_v25 = vrot.slane %v311_v31, %v1556_v7  ;;  %v274_v40 = vsel %vm270_vm15, %v272_v43, %v1139_v45  ;;  %vm292_vm0 = vcmp.lt.s32.totalorder %v290_v24, 0  ;;  %v294_v52 = vsub.s32 4294967295, %v290_v24 }
  0xab   : > { %v344_v53 = vsel %vm332_vm13, %v340_v36, 0.0  ;;  %v1898_v54 = vrot.slane %v1890_v50, %v1553_v5  ;;  %vm276_vm9 = vcmp.ge.s32.totalorder %v274_v40, 16  ;;  %v278_v55 = vsub.s32 31, %v274_v40 }
  0xac   : > { %vm354_vm1 = vcmp.eq.s32.totalorder %v1549_v1, %v352_v25  ;;  %vm356_vm2 = vcmp.eq.s32.totalorder %v1559_v8, %v352_v25  ;;  %v296_v56 = vsel %vm292_vm0, %v294_v52, %v290_v24  ;;  %v705_v57 = vrot.slane %v684_v48, %v1608_v39 }
  0xad   : > { %v366_v58 = vsel %vm354_vm1, %v364_v44, 0.0  ;;  %v368_v59 = vsel %vm356_vm2, %v364_v44, 0.0  ;;  %v280_v32 = vsel %vm276_vm9, %v278_v55, %v274_v40  ;;  %vm298_vm3 = vcmp.ge.s32.totalorder %v296_v56, 16 }
  0xae   : > { %1116 = vmatpush1.bf16.xpose.msra.mxu0 %v1115_v13  ;;  %1135 = vmatpush1.bf16.xpose.msra.mxu1 %v1115_v13  ;;  %v1903_v33 = vadd.f32 %v366_v58, %v342_v16  ;;  %v1905_v62 = vadd.f32 %v368_v59, %v344_v53  ;;  %vm282_vm4 = vcmp.gt.s32.totalorder %v280_v32, 0  ;;  %v300_v0 = vsub.s32 31, %v296_v56 }
  0xaf   : > { %1118 = vmatprep.subr.bf16.mxu0 %v1117_v20  ;;  %1128 = vmatprep.subr.bf16.mxu1 %v1117_v20  ;;  %v283_v2 = vsel %vm282_vm4, %v280_v32, 0  ;;  %v1119_v18 = vpack.c.bf16 %v645_v29, %v643_v28  ;;  %v669_v47 = vcombine.high %v1614_v42, %v1768_v9  ;;  %v336_v63 = vrot.slane %v312_v51, %v1556_v7 }
  0xb0   : > { %v759_v12 = vmul.f32 %v715_v14, %v1903_v33  ;;  %v769_v3 = vmul.f32 %v1898_v54, %v1905_v62  ;;  %vm286_vm5 = vcmp.lt.s32.totalorder %v283_v2, 15  ;;  %v302_v17 = vsel %vm298_vm3, %v300_v0, %v296_v56 }
  0xb1   : > { %v287_v27 = vsel %vm286_vm5, %v283_v2, 15  ;;  %vm304_vm6 = vcmp.gt.s32.totalorder %v302_v17, 0  ;;  %v707_v4 = vcombine.high %v705_v57, %v705_v57  ;;  %v360_v6 = vrot.slane %v1882_v38, %v1556_v7 }
  0xb2   : > { %842 = vmatprep.mubr.f32.mxu0 %v759_v12  ;;  %867 = vmatprep.mubr.f32.mxu1 %v769_v3  ;;  %v305_v11 = vsel %vm304_vm6, %v302_v17, 0  ;;  %v324_v21 = vrot.slane %v287_v27, %v1556_v7  ;;  %v683_v49 = vrot.slane %v669_v47, %v1608_v39  ;;  %v711_v61 = vrot.slane %v1877_v37, %v1556_v7 }
  0xb3   : > { %vm308_vm7 = vcmp.lt.s32.totalorder %v305_v11, 15  ;;  %v739_v35 = vrot.slane %v707_v4, %v1553_v5  ;;  %v727_v10 = vrot.slane %v1890_v50, %v1556_v7  ;;  %v735_v22 = vrot.slane %v707_v4, %v1556_v7 }
  0xb4   : > { %v309_v34 = vsel %vm308_vm7, %v305_v11, 15  ;;  %vm329_vm10 = vcmp.eq.s32.totalorder %v1549_v1, %v324_v21  ;;  %vm331_vm8 = vcmp.eq.s32.totalorder %v1559_v8, %v324_v21  ;;  %v761_v23 = vmul.f32 %v715_v14, %v1905_v62 }
  0xb5   : > { %v348_v15 = vrot.slane %v309_v34, %v1556_v7  ;;  %v341_v42 = vsel %vm329_vm10, %v336_v63, 0.0  ;;  %v343_v9 = vsel %vm331_vm8, %v336_v63, 0.0  ;;  %v771_v20 = vmul.f32 %v739_v35, %v1903_v33 }
  0xb6   : > { %1120 = vmatpush1.bf16.xpose.msra.mxu0 %v1119_v18  ;;  %1136 = vmatpush1.bf16.xpose.msra.mxu1 %v1119_v18  ;;  %v698_v28 = vrot.slane %v683_v49, %v1608_v39  ;;  %v719_v36 = vrot.slane %v705_v57, %v1556_v7  ;;  %v773_v38 = vmul.f32 %v739_v35, %v1905_v62 }
  0xb7   : > { %vm353_vm11 = vcmp.eq.s32.totalorder %v1549_v1, %v348_v15  ;;  %vm355_vm12 = vcmp.eq.s32.totalorder %v1559_v8, %v348_v15  ;;  %v723_v1 = vrot.slane %v705_v57, %v1553_v5 }
  0xb8   : > { %v365_v13 = vsel %vm353_vm11, %v360_v6, 0.0  ;;  %v367_v41 = vsel %vm355_vm12, %v360_v6, 0.0  ;;  %v747_v44 = vrot.slane %v698_v28, %v1553_v5  ;;  %v743_v46 = vrot.slane %v698_v28, %v1556_v7 }
  0xb9   : > { %v369_v19 = vadd.f32 %v365_v13, %v341_v42  ;;  %v371_v26 = vadd.f32 %v367_v41, %v343_v9  ;;  %v763_v37 = vmul.f32 %v723_v1, %v1903_v33  ;;  %v765_v48 = vmul.f32 %v723_v1, %v1905_v62 }
  0xba   : > { %v775_v50 = vmul.f32 %v747_v44, %v1903_v33  ;;  %v767_v5 = vmul.f32 %v1898_v54, %v1903_v33  ;;  %v777_v31 = vmul.f32 %v747_v44, %v1905_v62 }
  0xbb   : > { %v758_v29 = vmul.f32 %v711_v61, %v369_v19  ;;  %v768_v60 = vmul.f32 %v727_v10, %v371_v26  ;;  %v760_v8 = vmul.f32 %v711_v61, %v371_v26  ;;  %v770_v30 = vmul.f32 %v735_v22, %v369_v19 }
  0xbc   : > { %v762_v45 = vmul.f32 %v719_v36, %v369_v19  ;;  %v772_v39 = vmul.f32 %v735_v22, %v371_v26  ;;  %v764_v43 = vmul.f32 %v719_v36, %v371_v26  ;;  %v774_v24 = vmul.f32 %v743_v46, %v369_v19 }
  0xbd   : > { %843 = vmatmul.mubr.f32.vlgmr.msra.gmra.mrb[0].mxu0 %v758_v29  ;;  %868 = vmatmul.mubr.f32.vlgmr.msra.gmra.mrb[0].mxu1 %v768_v60  ;;  %v766_v7 = vmul.f32 %v727_v10, %v369_v19  ;;  %v776_v16 = vmul.f32 %v743_v46, %v371_v26 }
  0xbe   : > { %847 = vmatprep.mubr.f32.mxu0 %v761_v23  ;;  %872 = vmatprep.mubr.f32.mxu1 %v771_v20 }
  0xc1   : > { %848 = vmatmul.mubr.f32.gmra.mrb[2].mxu0 %v760_v8  ;;  %873 = vmatmul.mubr.f32.gmra.mrb[2].mxu1 %v770_v30 }
  0xc2   : > { %852 = vmatprep.mubr.f32.mxu0 %v763_v37  ;;  %877 = vmatprep.mubr.f32.mxu1 %v773_v38 }
  0xc5   : > { %853 = vmatmul.mubr.f32.gmra.mrb[4].mxu0 %v762_v45  ;;  %878 = vmatmul.mubr.f32.gmra.mrb[4].mxu1 %v772_v39 }
  0xc6   : > { %857 = vmatprep.mubr.f32.mxu0 %v765_v48  ;;  %882 = vmatprep.mubr.f32.mxu1 %v775_v50 }
  0xc9   : > { %858 = vmatmul.mubr.f32.gmra.mrb[6].mxu0 %v764_v43  ;;  %883 = vmatmul.mubr.f32.gmra.mrb[6].mxu1 %v774_v24 }
  0xca   : > { %862 = vmatprep.mubr.f32.mxu0 %v767_v5  ;;  %887 = vmatprep.mubr.f32.mxu1 %v777_v31 }
  0xcd   : > { %863 = vmatmul.mubr.f32.gmra.mrb[8].mxu0 %v766_v7  ;;  %888 = vmatmul.mubr.f32.gmra.mrb[8].mxu1 %v776_v16 }
 0x190   : > { %v844_v14 = vpop.f32.mrb[0].mxu0  ;;  %v869_v51 = vpop.f32.mrb[0].mxu1 }
 0x191   : > { %897 = vst [vmem:[%s226_s19] sm:$0xff] %v844_v14  ;;  %902 = vst [vmem:[%s226_s19 + $0x28] sm:$0xff] %v869_v51  ;;  %v846_v25 = vpop.f32.mrb[1].mxu0  ;;  %v871_v40 = vpop.f32.mrb[1].mxu1 }
 0x194   : > { %v849_v52 = vpop.f32.mrb[2].mxu0  ;;  %v874_v53 = vpop.f32.mrb[2].mxu1 }
 0x195   : > { %898 = vst [vmem:[%s226_s19 + $0x8] sm:$0xff] %v849_v52  ;;  %903 = vst [vmem:[%s226_s19 + $0x30] sm:$0xff] %v874_v53  ;;  %v851_v54 = vpop.f32.mrb[3].mxu0  ;;  %v876_v55 = vpop.f32.mrb[3].mxu1 }
 0x198   : > { %v854_v56 = vpop.f32.mrb[4].mxu0  ;;  %v879_v57 = vpop.f32.mrb[4].mxu1 }
 0x199   : > { %899 = vst [vmem:[%s226_s19 + $0x10] sm:$0xff] %v854_v56  ;;  %904 = vst [vmem:[%s226_s19 + $0x38] sm:$0xff] %v879_v57  ;;  %v856_v58 = vpop.f32.mrb[5].mxu0  ;;  %v881_v59 = vpop.f32.mrb[5].mxu1 }
 0x19c   : > { %v859_v32 = vpop.f32.mrb[6].mxu0  ;;  %v884_v33 = vpop.f32.mrb[6].mxu1 }
 0x19d   : > { %900 = vst [vmem:[%s226_s19 + $0x18] sm:$0xff] %v859_v32  ;;  %905 = vst [vmem:[%s226_s19 + $0x40] sm:$0xff] %v884_v33  ;;  %v861_v62 = vpop.f32.mrb[7].mxu0  ;;  %v886_v0 = vpop.f32.mrb[7].mxu1 }
 0x1a0   : > { %v864_v2 = vpop.f32.mrb[8].mxu0  ;;  %v889_v12 = vpop.f32.mrb[8].mxu1 }
 0x1a1   : > { %901 = vst [vmem:[%s226_s19 + $0x20] sm:$0xff] %v864_v2  ;;  %906 = vst [vmem:[%s226_s19 + $0x48] sm:$0xff] %v889_v12  ;;  %v866_v3 = vpop.f32.mrb[9].mxu0  ;;  %v891_v17 = vpop.f32.mrb[9].mxu1 }
 0x1a2   : > { %1291 = shalt.err (!%p1288_p2)
}
 0x1a3   : > { %s1292_s18 = scalar_lea.hbm %s1949_s28, 1280  ;;  %s1296_s5 = scalar_lea.hbm %s2000_s2, 2560 }
 0x1a4   : > { %p1293_p9 = scmp.ne.s32.totalorder %s1949_s28, %s1292_s18  ;;  %p1297_p6 = scmp.lt.u32.totalorder %s1949_s28, %s2000_s2 }
 0x1a5   : > { %p1298_p13 = scmp.lt.u32.totalorder %s1296_s5, %s1292_s18  ;;  %p1300_p8 = scmp.lt.u32.totalorder %s1292_s18, %s1949_s28 }
 0x1a6   : > { %p1294_p11 = pnand %p1293_p9, %p2013_p0 }
 0x1a7   : > { %p1299_p5 = por %p1298_p13, %p1297_p6 }
 0x1a8   : > { %p1295_p3 = pneg %p1294_p11 }
 0x1a9   : > { %p1301_p7 = por %p1300_p8, %p1299_p5 }
 0x1ab   : > { %p1302_p4 = pnand %p1301_p7, %p1295_p3 }
 0x1ad   : > { %1305 = shalt.err (!%p1302_p4)
}
 0x1ae   : > { %s1370_s21 = smov 128   ;;  %s1371_s19 = smov 8  }
 0x1af   : > { %1151 = dma.vmem_to_hbm [thread:$0]  (%p2013_p0), %s1944_s30, 1280, %s1949_s28, %s942_s12, %s1370_s21, %s1370_s21, %s1371_s19  }
 0x1b0 PF: > { %s971_s20 = sand.u32 1, %s1344_s9   ;;  %p2014_p10 = scmp.ne.s32.totalorder %s2006_s24, 0 }
 0x1b1   : > { %p2015_p12 = scmp.ge.s32.totalorder %s1364_s14, 2  ;;  %s972_s26 = scalar_lea.sflag [#allocation4], %s971_s20 }
 0x1b3   : > { %p1161_p1 = pnand %p2015_p12, %p2014_p10 }
 0x1b5   : > { %1339 = dma.done.wait (!%p1161_p1), %s972_s26, 1280  }
 0x1b6   : > { %1341 = vsyncadd (!%p1161_p1), %s972_s26, 4294966016  ;;  %s21_s14 = sadd.s32 1, %s1364_s14   ;;  %s2016_s9 = smov %s1348_s10 }
 0x1b7   : > { %p18_p2 = scmp.ge.s32.totalorder %s21_s14, 4   ;;  %s2017_s10 = smov %s1352_s11 }
 0x1b8   : > { %s2018_s11 = smov %s1443_s23  ;;  %s2019_s12 = smov %s1360_s13 }
 0x1b9   : > { %s2020_s13 = smov %s2022_s17  ;;  %20 = sbr.rel (!%p18_p2) target bundleno = 8 (0x8), region = 94 }
 0x1c0   :  { %977 = vsyncpa [#allocation3], 1 }
 0x1c1   :  { %979 = vsyncpa [#allocation3 + $0x1], 1 }
 0x1c2   :  { %980 = vsyncpa [#allocation6], 1 }
 0x1c3   :  { %982 = vsyncpa [#allocation6 + $0x1], 1 }
 0x1c4   :  { %983 = vsyncpa [#allocation4], 1 }
 0x1c5   :  { %985 = vsyncpa [#allocation4 + $0x1], 1 }

</bundles_post_ra>
